<compile_context>
chip_gen: v7x
topology: tpu7x:2x2x1
jax: 0.10.0
libtpu: 0.0.40
codegen_flags: <defaults>
</compile_context>

<pallas_src>
import math

import jax
import jax.numpy as jnp
from jax.experimental import pallas as pl
from jax.experimental.pallas import tpu as pltpu

# ----------------------------- config (small) ------------------------------
B = 2            # batch
S = 8            # sequence length
H = 32           # hidden_size
INTER = 4 * H    # intermediate_size = 128 -> lane-dense output
TM = 8           # rows per grid step; B*S = 16 rows -> grid of 2 (parallel)


# ------------------------------ helpers ------------------------------------
def _gelu(x):
    # exact erf-based gelu, matching the torch reference implementation
    return x * 0.5 * (1.0 + jax.lax.erf(x / math.sqrt(2.0)))


# ------------------------------ kernel --------------------------------------
def _intermediate_kernel(x_ref, w_ref, b_ref, out_ref):
    # x_ref: (TM, H), w_ref: (H, INTER), b_ref: (1, INTER), out_ref: (TM, INTER)
    y = jnp.dot(x_ref[...], w_ref[...], preferred_element_type=jnp.float32)
    out_ref[...] = _gelu(y + b_ref[...])


# ------------------------------ wrapper --------------------------------------
def bert_intermediate_forward(hidden_states, w, b):
    """hidden_states: (B, S, H); w: (H, INTER); b: (1, INTER) -> (B, S, INTER)."""
    b_, s_, h_ = hidden_states.shape
    m = b_ * s_
    x2d = hidden_states.reshape(m, h_)          # fold batch into rows

    out2d = pl.pallas_call(
        _intermediate_kernel,
        out_shape=jax.ShapeDtypeStruct((m, INTER), jnp.float32),
        grid=(m // TM,),
        in_specs=[
            pl.BlockSpec((TM, h_), lambda i: (i, 0)),        # row tile of x
            pl.BlockSpec((h_, INTER), lambda i: (0, 0)),     # weight (resident)
            pl.BlockSpec((1, INTER), lambda i: (0, 0)),      # bias (resident)
        ],
        out_specs=pl.BlockSpec((TM, INTER), lambda i: (i, 0)),
        compiler_params=pltpu.CompilerParams(
            dimension_semantics=("parallel",)),               # 2 TCs on v7x
    )(x2d, w, b)

    return out2d.reshape(b_, s_, INTER)


# --------------------------------- main --------------------------------------
if __name__ == "__main__":
    key = jax.random.PRNGKey(0)
    kx, kw, kb = jax.random.split(key, 3)

    hidden_states = jax.random.normal(kx, (B, S, H), jnp.float32)
    # torch nn.Linear weight is (out, in); we store its transpose (in, out).
    weight = 0.02 * jax.random.normal(kw, (H, INTER), jnp.float32)
    bias = 0.02 * jax.random.normal(kb, (1, INTER), jnp.float32)

    out = bert_intermediate_forward(hidden_states, weight, bias)
    jax.block_until_ready(out)

    # correctness check against a pure-JAX reference of the torch forward
    ref = _gelu(hidden_states.reshape(-1, H) @ weight + bias).reshape(B, S, INTER)
    assert out.shape == (B, S, INTER)
    assert jnp.allclose(out, ref, atol=1e-5, rtol=1e-5)

    print("KERNEL_OK")
</pallas_src>

<mosaic_0001>
module attributes {stable_mosaic.version = 11 : i64} {
  func.func @_intermediate_kernel(%arg0: i32, %arg1: memref<8x32xf32, #tpu.memory_space<vmem>>, %arg2: memref<32x128xf32, #tpu.memory_space<vmem>>, %arg3: memref<1x128xf32, #tpu.memory_space<vmem>>, %arg4: memref<8x128xf32, #tpu.memory_space<vmem>>) attributes {dimension_semantics = [#tpu.dimension_semantics<parallel>], iteration_bounds = array<i64: 2>, scalar_prefetch = 0 : i64, scratch_operands = 0 : i64, tpu.core_type = #tpu.core_type<tc>, window_params = [{transform_indices = @transform_0, window_bounds = array<i64: 8, 32>}, {pipeline_mode = #tpu.pipeline_mode<synchronous>, transform_indices = @transform_1, window_bounds = array<i64: 32, 128>}, {pipeline_mode = #tpu.pipeline_mode<synchronous>, transform_indices = @transform_2, window_bounds = array<i64: 1, 128>}, {transform_indices = @transform_3, window_bounds = array<i64: 8, 128>}]} {
    %c0 = arith.constant 0 : index
    %c0_0 = arith.constant 0 : index
    %0 = vector.load %arg1[%c0, %c0_0] : memref<8x32xf32, #tpu.memory_space<vmem>>, vector<8x32xf32>
    %c0_1 = arith.constant 0 : index
    %c0_2 = arith.constant 0 : index
    %1 = vector.load %arg2[%c0_1, %c0_2] : memref<32x128xf32, #tpu.memory_space<vmem>>, vector<32x128xf32>
    %cst = arith.constant dense<0.000000e+00> : vector<8x128xf32>
    %2 = tpu.matmul %0, %1, %cst {dimension_numbers = #tpu.dot_dimension_numbers<[1], [0], [0], [1], [0, 0, 1, 1], [], []>} : vector<8x32xf32>, vector<32x128xf32>, vector<8x128xf32> -> vector<8x128xf32>
    %c0_3 = arith.constant 0 : index
    %c0_4 = arith.constant 0 : index
    %3 = vector.load %arg3[%c0_3, %c0_4] : memref<1x128xf32, #tpu.memory_space<vmem>>, vector<1x128xf32>
    %4 = vector.broadcast %3 : vector<1x128xf32> to vector<8x128xf32>
    %5 = arith.addf %2, %4 : vector<8x128xf32>
    %cst_5 = arith.constant 5.000000e-01 : f32
    %6 = vector.broadcast %cst_5 : f32 to vector<8x128xf32>
    %7 = arith.mulf %5, %6 : vector<8x128xf32>
    %cst_6 = arith.constant 1.41421354 : f32
    %8 = vector.broadcast %cst_6 : f32 to vector<8x128xf32>
    %9 = arith.divf %5, %8 : vector<8x128xf32>
    %10 = math.erf %9 : vector<8x128xf32>
    %cst_7 = arith.constant 1.000000e+00 : f32
    %11 = vector.broadcast %cst_7 : f32 to vector<8x128xf32>
    %12 = arith.addf %11, %10 : vector<8x128xf32>
    %13 = arith.mulf %7, %12 : vector<8x128xf32>
    %c0_8 = arith.constant 0 : index
    %c0_9 = arith.constant 0 : index
    %14 = vector.load %arg4[%c0_8, %c0_9] : memref<8x128xf32, #tpu.memory_space<vmem>>, vector<8x128xf32>
    tpu.vector_store %arg4[%c0_8, %c0_9], %13 {strides = array<i32>} : memref<8x128xf32, #tpu.memory_space<vmem>>, vector<8x128xf32>,
    return
  }
  func.func @transform_0(%arg0: i32) -> (i32, i32) {
    %c0_i32 = arith.constant 0 : i32
    %c0_i32_0 = arith.constant 0 : i32
    return %arg0, %c0_i32 : i32, i32
  }
  func.func @transform_1(%arg0: i32) -> (i32, i32) {
    %c0_i32 = arith.constant 0 : i32
    %c0_i32_0 = arith.constant 0 : i32
    %c0_i32_1 = arith.constant 0 : i32
    return %c0_i32, %c0_i32_0 : i32, i32
  }
  func.func @transform_2(%arg0: i32) -> (i32, i32) {
    %c0_i32 = arith.constant 0 : i32
    %c0_i32_0 = arith.constant 0 : i32
    %c0_i32_1 = arith.constant 0 : i32
    return %c0_i32, %c0_i32_0 : i32, i32
  }
  func.func @transform_3(%arg0: i32) -> (i32, i32) {
    %c0_i32 = arith.constant 0 : i32
    %c0_i32_0 = arith.constant 0 : i32
    return %arg0, %c0_i32 : i32, i32
  }
}

</mosaic_0001>

<bundles_post_ra>
// kernel: tpu_custom_call.1
= control target key start
LH: loop header
LB: loop body
LE: loop exit
PB: predicated region body
PF: predicated region fallthrough
CT: control target
= control target key end

     0   :  { %8 = vsyncpa [#allocation3], 0  ;;  %s851_s0 = inlined_call_operand.hbm [shape: f32[16,32], index: 0, kind: input, shape index: {}]   ;;  %s852_s1 = inlined_call_operand.hbm [shape: f32[32,128], index: 1, kind: input, shape index: {}]   ;;  %s853_s2 = inlined_call_operand.vmem [shape: f32[1,128], index: 2, kind: input, shape index: {}]   ;;  %s854_s3 = inlined_call_operand.hbm [shape: f32[16,128], index: 3, kind: output, shape index: {}]  }
   0x1   :  { %10 = vsyncpa [#allocation3 + $0x1], 0 }
   0x2   :  { %11 = vsyncpa [#allocation6], 0 }
   0x3   :  { %12 = vsyncpa [#allocation4], 0 }
   0x4   :  { %14 = vsyncpa [#allocation4 + $0x1], 0  ;;  %s648_s12 = smov 0   ;;  %s650_s13 = smov 0  }
   0x5   :  { %s652_s14 = smov 0   ;;  %s654_s15 = smov 0  }
   0x6 LB: > { %s669_s16 = sadd.s32 4294967295, %s618_s15   ;;  %s388_s17 = sadd.s32 4294967294, %s618_s15   ;;  %s618_s15 = sphi %s654_s15, %s874_s15   ;;  %s614_s14 = sphi %s652_s14, %s873_s14   ;;  %s610_s13 = sphi %s650_s13, %s872_s13   ;;  %s606_s12 = sphi %s648_s12, %s871_s12  }
   0x7   : > { %p40_p0 = scmp.ne.s32.totalorder %s610_s13, %s606_s12  ;;  %p855_p1 = scmp.eq.s32.totalorder %s669_s16, 0 }
   0x8   : > { %p112_p3 = scmp.eq.s32.totalorder %s388_s17, 1  ;;  %p389_p5 = scmp.ge.s32.totalorder %s618_s15, 1 }
   0x9   : > { %p678_p4 = por %p855_p1, %p40_p0  ;;  %p119_p7 = scmp.lt.s32.totalorder %s618_s15, 3 }
   0xa   : > { %p683_p6 = por %p112_p3, %p40_p0  ;;  %s620_s21 = smov [#allocation5]  }
   0xb   : > { %s858_s18 = scalar_select %p678_p4, 1, 0 }
   0xc   : > { %s859_s19 = scalar_select %p683_p6, 1, 0 }
   0xd   : > { %p688_p8 = pnand %p389_p5, %p119_p7  ;;  %s131_s22 = sshll.u32 %s620_s21, 4  ;;  %s692_s22 = int_to_ptr.vmem [resolvable:$true] %s131_s22 }
   0xe   : > { %s704_s24 = sadd.s32 1, %s618_s15   ;;  %s27_s25 = sadd.s32 1, %s614_s14 }
   0xf   : > { %s860_s20 = scalar_select %p688_p8, 1, 0 }
  0x10   : > { %p434_p9 = pneg %p688_p8  ;;  %s24_s26 = ssub.s32 %s618_s15, %s704_s24 }
  0x11   : > { %s490_s29 = scalar_lea.hbm %s852_s1, 512 }
  0x12   : > { %p699_p11 = pnand %p434_p9, %p855_p1  ;;  %p491_p12 = scmp.ne.s32.totalorder %s852_s1, %s490_s29 }
  0x13   : > { %p497_p5 = scmp.lt.u32.totalorder %s490_s29, %s852_s1 }
  0x14   : > { %p492_p13 = pneg %p699_p11 }
  0x16   : > { %p493_p0 = pnand %p492_p13, %p491_p12 }
  0x18   : > { %p494_p3 = pneg %p493_p0 }
  0x1a   : > { %p499_p7 = pnand %p497_p5, %p494_p3 }
  0x1c   : > { %502 = shalt.err (!%p499_p7)
}
  0x1d   : > { %s503_s7 = scalar_lea.vmem %s692_s22, 512  ;;  %p511_p2 = scmp.lt.s32.totalorder %s692_s22, %s692_s22 }
  0x1e   : > { %p504_p9 = scmp.ne.s32.totalorder %s692_s22, %s503_s7  ;;  %p512_p6 = scmp.lt.s32.totalorder %s503_s7, %s503_s7 }
  0x20   : > { %p506_p10 = pnand %p504_p9, %p492_p13  ;;  %p513_p4 = por %p512_p6, %p511_p2 }
  0x22   : > { %p507_p1 = pneg %p506_p10 }
  0x24   : > { %p514_p8 = pnand %p513_p4, %p507_p1 }
  0x26   : > { %517 = shalt.err (!%p514_p8)
}
  0x27   : > { %s621_s8 = smov 128   ;;  %s622_s9 = smov 8  }
  0x28   : > { %437 = dma.hbm_to_vmem [thread:$0]  (!%p699_p11), %s852_s1, 512, %s692_s22, [#allocation6], %s621_s8, %s621_s8, %s622_s9  }
  0x29   : > { %p25_p2 = scmp.eq.s32.totalorder %s24_s26, 0  ;;  %p34_p1 = scmp.ne.s32.totalorder %s614_s14, %s610_s13 }
  0x2a   : > { %p35_p4 = scmp.eq.s32.totalorder %s618_s15, 0  ;;  %p447_p6 = scmp.lt.s32.totalorder %s618_s15, 2 }
  0x2b   : > { %s735_s17 = scalar_select %p25_p2, %s614_s14, %s27_s25  }
  0x2c   : > { %p36_p8 = por %p35_p4, %p34_p1  ;;  %p862_p10 = scmp.eq.s32.totalorder %s669_s16, 1 }
  0x2d   : > { %s148_s27 = sand.u32 1, %s614_s14   ;;  %s393_s28 = sshll.u32 %s618_s15, 7 }
  0x2e   : > { %p739_p12 = por %p862_p10, %p34_p1  ;;  %s392_s29 = sshll.u32 %s148_s27, 3 }
  0x2f   : > { %s748_s4 = scalar_lea.hbm %s851_s0, %s393_s28  ;;  %s152_s22 = scalar_lea.vmem [#allocation2], %s392_s29 }
  0x30   : > { %s159_s25 = sshll.u32 %s152_s22, 4  ;;  %p750_p11 = pnand %p447_p6, %p36_p8  ;;  %s754_s25 = int_to_ptr.vmem [resolvable:$true] %s159_s25 }
  0x31   : > { %s149_s5 = scalar_lea.sflag [#allocation3], %s148_s27  ;;  %s518_s6 = scalar_lea.hbm %s748_s4, 128 }
  0x32   : > { %p519_p13 = scmp.ne.s32.totalorder %s748_s4, %s518_s6  ;;  %p520_p0 = pneg %p750_p11 }
  0x33   : > { %s523_s9 = scalar_lea.hbm %s851_s0, 256  ;;  %p524_p7 = scmp.lt.u32.totalorder %s748_s4, %s851_s0 }
  0x34   : > { %p521_p3 = pnand %p520_p0, %p519_p13  ;;  %p525_p9 = scmp.lt.u32.totalorder %s523_s9, %s518_s6 }
  0x35   : > { %p527_p1 = scmp.lt.u32.totalorder %s518_s6, %s748_s4 }
  0x36   : > { %p522_p5 = pneg %p521_p3  ;;  %p526_p2 = por %p525_p9, %p524_p7 }
  0x38   : > { %p528_p4 = por %p527_p1, %p526_p2 }
  0x3a   : > { %p529_p6 = pnand %p528_p4, %p522_p5 }
  0x3c   : > { %532 = shalt.err (!%p529_p6)
}
  0x3d   : > { %s533_s27 = scalar_lea.vmem %s754_s25, 128  ;;  %s623_s28 = smov [#allocation2]  }
  0x3e   : > { %p534_p8 = scmp.ne.s32.totalorder %s754_s25, %s533_s27  ;;  %s538_s29 = sshll.u32 %s623_s28, 4  ;;  %s539_s29 = int_to_ptr.vmem [resolvable:$false] %s538_s29 }
  0x3f   : > { %s540_s23 = scalar_lea.vmem %s539_s29, 256  ;;  %p541_p3 = scmp.lt.s32.totalorder %s754_s25, %s539_s29 }
  0x40   : > { %p536_p10 = pnand %p534_p8, %p520_p0  ;;  %p542_p7 = scmp.lt.s32.totalorder %s540_s23, %s533_s27 }
  0x42   : > { %p537_p13 = pneg %p536_p10  ;;  %p543_p9 = por %p542_p7, %p541_p3 }
  0x44   : > { %p544_p2 = pnand %p543_p9, %p537_p13 }
  0x46   : > { %547 = shalt.err (!%p544_p2)
}
  0x47   : > { %441 = dma.hbm_to_vmem [thread:$0]  (!%p750_p11), %s748_s4, 128, %s754_s25, %s149_s5  }
  0x48   : > { %p865_p5 = scmp.ne.s32.totalorder %s860_s20, 0 }
  0x49   : > { %s784_s30 = sand.u32 (!%p865_p5), 1, %s610_s13   ;;  %p866_p0 = scmp.ne.s32.totalorder (!%p865_p5), %s858_s18, 0 }
  0x4a   : > { %168 = sbr.rel (%p865_p5) target bundleno = 340 (0x154), region = 32  ;;  %s395_s22 = sshll.u32 (!%p865_p5), %s784_s30, 3 }
  0x4b   : > { %s171_s6 = scalar_lea.sflag (!%p865_p5), [#allocation3], %s784_s30  ;;  %s174_s7 = scalar_lea.vmem (!%p865_p5), [#allocation2], %s395_s22 }
  0x51   : > { %593 = dma.done.wait (%p866_p0), %s171_s6, 128  }
  0x52   : > { %595 = vsyncadd (%p866_p0), %s171_s6, 4294967168  ;;  %p867_p11 = scmp.eq.s32.totalorder %s669_s16, 0 }
  0x54   : > { %597 = dma.done.wait (%p867_p11), [#allocation6], 512   ;;  %p868_p1 = pmov %p867_p11 }
  0x55   : > { %v624_v0 = vmov 0.0|0.0   ;;  %vm625_vm0 = vmmov 0   ;;  %v626_v1 = vmov 0.0   ;;  %v202_v2 = vld [vmem:[#allocation5] sm:$0xff]  ;;  %v203_v3 = vld [vmem:[#allocation5 + $0x8] sm:$0xff]  ;;  %v204_v4 = vld [vmem:[#allocation5 + $0x10] sm:$0xff] }
  0x56   : > { %599 = vsyncadd (%p868_p1), [#allocation6], 4294966784  ;;  %420 = vmatprep.subr.bf16.mxu0 %v624_v0  ;;  %417 = vmatprep.mubr.msk.f32.mxu0 %vm625_vm0, %v626_v1  ;;  %v421_v5 = vpack.c.bf16 %v203_v3, %v202_v2  ;;  %v205_v6 = vld [vmem:[#allocation5 + $0x18] sm:$0xff]  ;;  %vm213_vm1 = vcmask 261120   ;;  %v398_v9 = vld [vmem:[%s853_s2] ss:$0 sm:$0xff] }
  0x57   : > { %v424_v7 = vpack.c.bf16 %v205_v6, %v204_v4  ;;  %v201_v8 = vld [vmem:[%s174_s7] sm:$0xff]  ;;  %s401_s4 = sshll.u32 %s669_s16, 7  ;;  %s200_s25 = scalar_lea.vmem [#allocation7], %s395_s22 }
  0x58   : > { %422 = vmatpush3.bf16.msra.mxu0 %v421_v5  ;;  %s308_s26 = sshll.u32 %s200_s25, 4  ;;  %s807_s9 = scalar_lea.hbm %s854_s3, %s401_s4  ;;  %s809_s26 = int_to_ptr.vmem [resolvable:$true] %s308_s26 }
  0x59   : > { %423 = vmatprep.subr.bf16.mxu0 %v624_v0  ;;  %s295_s10 = scalar_lea.sflag [#allocation4], %s784_s30  ;;  %s548_s11 = scalar_lea.vmem %s809_s26, 128 }
  0x5a   : > { %p549_p4 = scmp.ne.s32.totalorder %s809_s26, %s548_s11  ;;  %s627_s16 = smov [#allocation7]  }
  0x5b   : > { %s552_s27 = sshll.u32 %s627_s16, 4  ;;  %s553_s27 = int_to_ptr.vmem [resolvable:$false] %s552_s27 }
  0x5c   : > { %425 = vmatpush3.bf16.msra.mxu0 %v424_v7  ;;  %p550_p6 = pnand %p549_p4, %p739_p12  ;;  %s554_s28 = scalar_lea.vmem %s553_s27, 256 }
  0x5d   : > { %p555_p10 = scmp.lt.s32.totalorder %s809_s26, %s553_s27  ;;  %p556_p13 = scmp.lt.s32.totalorder %s554_s28, %s548_s11 }
  0x5e   : > { %p551_p8 = pneg %p550_p6 }
  0x5f   : > { %418 = vmatmul.mubr.msk.f32.vlgmr.msra.gmra.mrb[0].mxu0 %vm213_vm1, %v201_v8  ;;  %p557_p3 = por %p556_p13, %p555_p10 }
  0x61   : > { %p558_p7 = pnand %p557_p3, %p551_p8 }
 0x132   : > { %v283_v10 = vpop.f32.mrb[0].mxu0 }
 0x133   : > { %v284_v11 = vadd.f32 %v398_v9, %v283_v10  ;;  %v419_v12 = vpop.f32.mrb[1].mxu0 }
 0x135   : > { %v289_v13 = vmul.f32 0.70710677, %v284_v11  ;;  %v287_v15 = vmul.f32 0.5, %v284_v11 }
 0x137   : > { %488 = verf.f32 %v289_v13 }
 0x141   : > { %v489_v14 = vpop.eup %488 }
 0x142   : > { %v291_v16 = vadd.f32 1.0, %v489_v14 }
 0x144   : > { %v292_v17 = vmul.f32 %v291_v16, %v287_v15 }
 0x146   : > { %293 = vst [vmem:[%s200_s25] sm:$0xff] %v292_v17 }
 0x147   : > { %561 = shalt.err (!%p558_p7)
}
 0x148   : > { %s562_s29 = scalar_lea.hbm %s807_s9, 128  ;;  %s566_s22 = scalar_lea.hbm %s854_s3, 256 }
 0x149   : > { %p563_p9 = scmp.ne.s32.totalorder %s807_s9, %s562_s29  ;;  %p567_p0 = scmp.lt.u32.totalorder %s807_s9, %s854_s3 }
 0x14a   : > { %p568_p11 = scmp.lt.u32.totalorder %s566_s22, %s562_s29  ;;  %p570_p4 = scmp.lt.u32.totalorder %s562_s29, %s807_s9 }
 0x14b   : > { %p564_p2 = pnand %p563_p9, %p739_p12 }
 0x14c   : > { %p569_p1 = por %p568_p11, %p567_p0 }
 0x14d   : > { %p565_p5 = pneg %p564_p2 }
 0x14e   : > { %p571_p6 = por %p570_p4, %p569_p1 }
 0x150   : > { %p572_p8 = pnand %p571_p6, %p565_p5 }
 0x152   : > { %575 = shalt.err (!%p572_p8)
}
 0x153   : > { %432 = dma.vmem_to_hbm [thread:$0]  (%p739_p12), %s809_s26, 128, %s807_s9, %s295_s10  }
 0x154 PF: > { %s320_s18 = sand.u32 1, %s606_s12   ;;  %p869_p10 = scmp.ne.s32.totalorder %s859_s19, 0 }
 0x155   : > { %p870_p13 = scmp.ge.s32.totalorder %s618_s15, 2  ;;  %s321_s20 = scalar_lea.sflag [#allocation4], %s320_s18 }
 0x157   : > { %p443_p3 = pnand %p870_p13, %p869_p10 }
 0x159   : > { %601 = dma.done.wait (!%p443_p3), %s321_s20, 128  }
 0x15a   : > { %603 = vsyncadd (!%p443_p3), %s321_s20, 4294967168  ;;  %p17_p7 = scmp.ge.s32.totalorder %s704_s24, 4   ;;  %s871_s12 = smov %s610_s13 }
 0x15b   : > { %s872_s13 = smov %s614_s14  ;;  %s873_s14 = smov %s735_s17 }
 0x15c   : > { %s874_s15 = smov %s704_s24  ;;  %19 = sbr.rel (!%p17_p7) target bundleno = 6 (0x6), region = 81 }
 0x163   :  { %326 = vsyncpa [#allocation3], 1 }
 0x164   :  { %328 = vsyncpa [#allocation3 + $0x1], 1 }
 0x165   :  { %329 = vsyncpa [#allocation6], 1 }
 0x166   :  { %330 = vsyncpa [#allocation4], 1 }
 0x167   :  { %332 = vsyncpa [#allocation4 + $0x1], 1 }

</bundles_post_ra>
